<compile_context>
chip_gen: v7x
topology: tpu7x:2x2x1
jax: 0.10.0
libtpu: 0.0.40
codegen_flags: <defaults>
</compile_context>

<pallas_src>
import jax
import jax.numpy as jnp
from jax.experimental import pallas as pl
from jax.experimental.pallas import tpu as pltpu


def _point_updater_kernel(coef_ref,            # SMEM (1, 1) f32 scalar
                          x_ref,               # VMEM (D+O, TF) io dtype; rows [:dim] = emb^T
                          w1_ref, b1_ref,      # VMEM (M, D+O) io dtype, (M, 1) f32
                          w2g_ref, w2v_ref,    # VMEM (dim, M) f32
                          b2g_ref, b2v_ref,    # VMEM (dim, 1) f32
                          out_ref):            # VMEM (dim, TF) out dtype
    x = x_ref[...]

    # Layer 1 (torch.cat folded into the stacked input): one MXU dot, f32 acc.
    h = jnp.dot(w1_ref[...], x, preferred_element_type=jnp.float32) + b1_ref[...]
    h = jnp.maximum(h, 0.0)

    # Layer 2, gate / value heads pre-split in the wrapper.  Weights stay f32,
    # so the (M, TF) hidden activation never needs a repack/cast pass.
    gate = jnp.dot(w2g_ref[...], h, preferred_element_type=jnp.float32) + b2g_ref[...]
    val = jnp.dot(w2v_ref[...], h, preferred_element_type=jnp.float32) + b2v_ref[...]

    # displacement = sigmoid(gate) * value * coefficient (all elementwise f32)
    disp = jax.nn.sigmoid(gate) * val * coef_ref[0, 0]

    # Gated residual update; embeddings are rows [:dim] of the stacked input.
    emb = x[:out_ref.shape[0], :].astype(jnp.float32)
    out_ref[...] = (emb + disp).astype(out_ref.dtype)


def _round_down(x, m):
    return (x // m) * m


def point_updater_cf(x_cf, coefficient, w1, b1, w2, b2, *, dim,
                     tile_f=16384, out_dtype=None):
    """Channels-first fast path (recommended interface).

    x_cf: (D+O, F) stacked channels-first input; rows [:dim] are embeddings^T,
    rows [dim:] are aggregated^T.  Returns updated embeddings^T, shape (dim, F).
    Keeping this layout persistent in the calling model removes all
    wrapper-side transpose / concat HBM passes: the (HBM-bound) kernel then
    touches every point exactly once on read and once on write.
    """
    C_in, F = x_cf.shape
    M = w1.shape[1]
    assert w1.shape[0] == C_in, "w1 must match the stacked input width D+O"
    assert w2.shape == (M, 2 * dim), "MLP output width must equal 2*dim"
    assert 0 < dim <= C_in

    io_dtype = jnp.dtype(x_cf.dtype)
    out_dtype = io_dtype if out_dtype is None else jnp.dtype(out_dtype)

    # ---- parameter prep (tiny arrays; negligible HBM cost) -----------------
    w1_t = w1.T.astype(io_dtype)                              # (M, D+O)
    b1_col = b1.astype(jnp.float32).reshape(M, 1)             # (M, 1)
    # Second layer kept f32 regardless of io_dtype (see module header).
    w2_f32 = w2.astype(jnp.float32)
    w2g_t = w2_f32[:, :dim].T                                 # (dim, M) gate head
    w2v_t = w2_f32[:, dim:].T                                 # (dim, M) value head
    b2_f32 = b2.astype(jnp.float32)
    b2g_col = b2_f32[:dim].reshape(dim, 1)
    b2v_col = b2_f32[dim:].reshape(dim, 1)
    coef = jnp.asarray(coefficient, jnp.float32).reshape(1, 1)

    # ---- point-tile selection ----------------------------------------------
    if F <= 128:
        tile_f = F                               # single narrow (full-dim) block
    else:
        tile_f = max(128, _round_down(min(int(tile_f), F), 128))
        # v7x megacore: keep >= 2 grid steps so both TensorCores get work.
        if F >= 256:
            tile_f = min(tile_f, max(128, _round_down(pl.cdiv(F, 2), 128)))
        # VMEM budget: double-buffered activation streams <= ~24 MiB, which is
        # comfortable on v5e (16 MiB scoped default) / v6e / v7x (32 MiB default,
        # 64 MiB physical on v7x) once vmem_limit_bytes below is applied.
        bytes_per_point = 2 * (C_in * io_dtype.itemsize + dim * out_dtype.itemsize)
        budget = 24 * 1024 * 1024
        tile_f = min(tile_f, max(128, _round_down(budget // bytes_per_point, 128)))

    grid = (pl.cdiv(F, tile_f),)

    # Explicit scoped-VMEM limit with headroom (review: v5e default is 16 MiB,
    # v7x physical is only 64 MiB).
    stream_bytes = 2 * tile_f * (C_in * io_dtype.itemsize + dim * out_dtype.itemsize)
    weight_bytes = 2 * 6 * 128 * max(M, dim) * 4     # lane-padded small blocks, x2 buffers
    vmem_limit = int(min(48 << 20, max(16 << 20, 2 * (stream_bytes + weight_bytes))))

    cost = pl.CostEstimate(
        flops=2 * F * (C_in * M + M * 2 * dim),
        transcendentals=F * dim,
        bytes_accessed=(x_cf.size * io_dtype.itemsize
                        + F * dim * out_dtype.itemsize
                        + w1_t.size * io_dtype.itemsize
                        + (w2g_t.size + w2v_t.size + b1_col.size
                           + b2g_col.size + b2v_col.size) * 4),
    )

    out_cf = pl.pallas_call(
        _point_updater_kernel,
        out_shape=jax.ShapeDtypeStruct((dim, F), out_dtype),
        grid_spec=pltpu.PrefetchScalarGridSpec(
            num_scalar_prefetch=0,
            grid=grid,
            in_specs=[
                pl.BlockSpec(memory_space=pltpu.SMEM),            # coefficient (1,1)
                pl.BlockSpec((C_in, tile_f), lambda i: (0, i)),   # stacked x^T stream
                # NOTE: the constant-index weight/bias blocks below are tiny
                # (<~100 KiB total even lane-padded), so we deliberately keep
                # the default double-buffering instead of depending on
                # pipeline_mode=pl.Buffered(1) support.
                pl.BlockSpec((M, C_in), lambda i: (0, 0)),        # w1^T
                pl.BlockSpec((M, 1), lambda i: (0, 0)),           # b1
                pl.BlockSpec((dim, M), lambda i: (0, 0)),         # w2 gate^T
                pl.BlockSpec((dim, M), lambda i: (0, 0)),         # w2 value^T
                pl.BlockSpec((dim, 1), lambda i: (0, 0)),         # b2 gate
                pl.BlockSpec((dim, 1), lambda i: (0, 0)),         # b2 value
            ],
            out_specs=pl.BlockSpec((dim, tile_f), lambda i: (0, i)),
        ),
        compiler_params=pltpu.CompilerParams(
            dimension_semantics=("parallel",),
            vmem_limit_bytes=vmem_limit),
        cost_estimate=cost,
    )(coef, x_cf, w1_t, b1_col, w2g_t, w2v_t, b2g_col, b2v_col)
    return out_cf


def point_updater(embeddings, aggregated, coefficient, w1, b1, w2, b2, *, dim,
                  tile_f=16384, io_dtype=None):
    """Module-compatible interface: embeddings (F, D), aggregated (F, O) -> (F, D).

    Pays exactly one fused XLA pre-pass (cast + transpose + stack of the two
    inputs into a single (D+O, F) channels-first slab) plus one output
    transpose.  For a bandwidth-bound kernel those extra HBM passes matter, so
    prefer point_updater_cf() with a persistent channels-first layout when the
    surrounding model allows it.

    io_dtype: dtype of the streamed activations / first-layer weight (e.g.
    jnp.bfloat16 on v6e/v7x to halve activation HBM traffic).  Accumulation,
    the second layer and all elementwise math stay in f32.  NOTE: with a
    narrow io_dtype the residual uses the rounded embeddings
    (out = io(emb) + disp); keep f32 streaming if the residual must be exact.
    """
    F, D = embeddings.shape
    F2, O = aggregated.shape
    M = w1.shape[1]
    assert F2 == F
    assert D == dim, "PointUpdater requires embedding width == dimension"
    assert w1.shape[0] == D + O and w2.shape == (M, 2 * dim)

    io_dtype = embeddings.dtype if io_dtype is None else jnp.dtype(io_dtype)

    # Single fused pre-pass: one HBM read of each input, one write of the
    # stacked channels-first buffer (replaces two standalone transpose+cast ops).
    x_cf = jnp.concatenate(
        [embeddings.T.astype(io_dtype), aggregated.T.astype(io_dtype)], axis=0)

    out_cf = point_updater_cf(x_cf, coefficient, w1, b1, w2, b2, dim=dim,
                              tile_f=tile_f, out_dtype=embeddings.dtype)
    # Restore the module's (F, D) interface outside the kernel.
    return out_cf.T


def point_updater_ref(embeddings, aggregated, coefficient, w1, b1, w2, b2, *, dim):
    x = jnp.concatenate([embeddings, aggregated], axis=-1)
    h = jnp.maximum(x @ w1 + b1, 0.0)
    y = h @ w2 + b2
    disp = jax.nn.sigmoid(y[..., :dim]) * y[..., dim:] * coefficient
    return embeddings + disp


if __name__ == "__main__":
    # PointUpdater(dimension=8, in_channels=16, mid_channels=32, out_channels=16)
    dim = 8            # D: embedding / displacement dimension
    O = 8              # aggregated feature width
    in_ch = dim + O    # 16
    mid_ch = 32
    out_ch = 2 * dim   # 16
    F = 1024           # number of points (small demo; kernel targets F >> 1e5)

    key = jax.random.PRNGKey(0)
    k_emb, k_agg, k_w1, k_b1, k_w2, k_b2 = jax.random.split(key, 6)

    embeddings = jax.random.normal(k_emb, (F, dim), jnp.float32)
    aggregated = jax.random.normal(k_agg, (F, O), jnp.float32)
    coefficient = jnp.float32(0.1)

    # Deterministic synthetic parameters (Linear -> ReLU -> Linear).
    w1 = jax.random.normal(k_w1, (in_ch, mid_ch), jnp.float32) * 0.1
    b1 = jax.random.normal(k_b1, (mid_ch,), jnp.float32) * 0.1
    w2 = jax.random.normal(k_w2, (mid_ch, out_ch), jnp.float32) * 0.1
    b2 = jax.random.normal(k_b2, (out_ch,), jnp.float32) * 0.1

    ref = point_updater_ref(embeddings, aggregated, coefficient,
                            w1, b1, w2, b2, dim=dim)

    # 1) Module-compatible (F, D) interface, f32 streamed (exact residual).
    out = point_updater(embeddings, aggregated, coefficient,
                        w1, b1, w2, b2, dim=dim)
    out = jax.block_until_ready(out)
    assert out.shape == (F, dim)
    assert jnp.allclose(out, ref, atol=1e-4, rtol=1e-4)

    # 2) Channels-first fast path (recommended): zero wrapper HBM passes.
    x_cf = jnp.concatenate([embeddings.T, aggregated.T], axis=0)   # model-side layout
    out_cf = point_updater_cf(x_cf, coefficient, w1, b1, w2, b2, dim=dim)
    out_cf = jax.block_until_ready(out_cf)
    assert out_cf.shape == (dim, F)
    assert jnp.allclose(out_cf.T, ref, atol=1e-4, rtol=1e-4)

    # 3) bf16-streamed io (halves activation HBM traffic on v6e/v7x); f32 acc.
    out_bf16 = point_updater(embeddings, aggregated, coefficient,
                             w1, b1, w2, b2, dim=dim, io_dtype=jnp.bfloat16)
    out_bf16 = jax.block_until_ready(out_bf16)
    assert out_bf16.shape == (F, dim)
    assert jnp.allclose(out_bf16.astype(jnp.float32), ref, atol=5e-2, rtol=5e-2)

    print("KERNEL_OK")
</pallas_src>

<mosaic_0001>
module attributes {stable_mosaic.version = 11 : i64} {
  func.func @_point_updater_kernel(%arg0: i32, %arg1: memref<1x1xf32, #tpu.memory_space<smem>>, %arg2: memref<16x512xf32, #tpu.memory_space<vmem>>, %arg3: memref<32x16xf32, #tpu.memory_space<vmem>>, %arg4: memref<32x1xf32, #tpu.memory_space<vmem>>, %arg5: memref<8x32xf32, #tpu.memory_space<vmem>>, %arg6: memref<8x32xf32, #tpu.memory_space<vmem>>, %arg7: memref<8x1xf32, #tpu.memory_space<vmem>>, %arg8: memref<8x1xf32, #tpu.memory_space<vmem>>, %arg9: memref<8x512xf32, #tpu.memory_space<vmem>>) attributes {dimension_semantics = [#tpu.dimension_semantics<parallel>], iteration_bounds = array<i64: 2>, scalar_prefetch = 0 : i64, scratch_operands = 0 : i64, tpu.core_type = #tpu.core_type<tc>, window_params = [{transform_indices = @transform_0, window_bounds = array<i64: 1, 1>}, {transform_indices = @transform_1, window_bounds = array<i64: 16, 512>}, {pipeline_mode = #tpu.pipeline_mode<synchronous>, transform_indices = @transform_2, window_bounds = array<i64: 32, 16>}, {pipeline_mode = #tpu.pipeline_mode<synchronous>, transform_indices = @transform_3, window_bounds = array<i64: 32, 1>}, {pipeline_mode = #tpu.pipeline_mode<synchronous>, transform_indices = @transform_4, window_bounds = array<i64: 8, 32>}, {pipeline_mode = #tpu.pipeline_mode<synchronous>, transform_indices = @transform_5, window_bounds = array<i64: 8, 32>}, {pipeline_mode = #tpu.pipeline_mode<synchronous>, transform_indices = @transform_6, window_bounds = array<i64: 8, 1>}, {pipeline_mode = #tpu.pipeline_mode<synchronous>, transform_indices = @transform_7, window_bounds = array<i64: 8, 1>}, {transform_indices = @transform_8, window_bounds = array<i64: 8, 512>}]} {
    %c0 = arith.constant 0 : index
    %c0_0 = arith.constant 0 : index
    %0 = vector.load %arg2[%c0, %c0_0] : memref<16x512xf32, #tpu.memory_space<vmem>>, vector<16x512xf32>
    %c0_1 = arith.constant 0 : index
    %c0_2 = arith.constant 0 : index
    %1 = vector.load %arg3[%c0_1, %c0_2] : memref<32x16xf32, #tpu.memory_space<vmem>>, vector<32x16xf32>
    %cst = arith.constant dense<0.000000e+00> : vector<32x512xf32>
    %2 = tpu.matmul %1, %0, %cst {dimension_numbers = #tpu.dot_dimension_numbers<[1], [0], [0], [1], [0, 0, 1, 1], [], []>} : vector<32x16xf32>, vector<16x512xf32>, vector<32x512xf32> -> vector<32x512xf32>
    %c0_3 = arith.constant 0 : index
    %c0_4 = arith.constant 0 : index
    %3 = vector.load %arg4[%c0_3, %c0_4] : memref<32x1xf32, #tpu.memory_space<vmem>>, vector<32x1xf32>
    %4 = vector.broadcast %3 : vector<32x1xf32> to vector<32x512xf32>
    %5 = arith.addf %2, %4 : vector<32x512xf32>
    %cst_5 = arith.constant 0.000000e+00 : f32
    %6 = vector.broadcast %cst_5 : f32 to vector<32x512xf32>
    %7 = arith.maximumf %5, %6 : vector<32x512xf32>
    %c0_6 = arith.constant 0 : index
    %c0_7 = arith.constant 0 : index
    %8 = vector.load %arg5[%c0_6, %c0_7] : memref<8x32xf32, #tpu.memory_space<vmem>>, vector<8x32xf32>
    %cst_8 = arith.constant dense<0.000000e+00> : vector<8x512xf32>
    %9 = tpu.matmul %8, %7, %cst_8 {dimension_numbers = #tpu.dot_dimension_numbers<[1], [0], [0], [1], [0, 0, 1, 1], [], []>} : vector<8x32xf32>, vector<32x512xf32>, vector<8x512xf32> -> vector<8x512xf32>
    %c0_9 = arith.constant 0 : index
    %c0_10 = arith.constant 0 : index
    %10 = vector.load %arg7[%c0_9, %c0_10] : memref<8x1xf32, #tpu.memory_space<vmem>>, vector<8x1xf32>
    %11 = vector.broadcast %10 : vector<8x1xf32> to vector<8x512xf32>
    %12 = arith.addf %9, %11 : vector<8x512xf32>
    %c0_11 = arith.constant 0 : index
    %c0_12 = arith.constant 0 : index
    %13 = vector.load %arg6[%c0_11, %c0_12] : memref<8x32xf32, #tpu.memory_space<vmem>>, vector<8x32xf32>
    %cst_13 = arith.constant dense<0.000000e+00> : vector<8x512xf32>
    %14 = tpu.matmul %13, %7, %cst_13 {dimension_numbers = #tpu.dot_dimension_numbers<[1], [0], [0], [1], [0, 0, 1, 1], [], []>} : vector<8x32xf32>, vector<32x512xf32>, vector<8x512xf32> -> vector<8x512xf32>
    %c0_14 = arith.constant 0 : index
    %c0_15 = arith.constant 0 : index
    %15 = vector.load %arg8[%c0_14, %c0_15] : memref<8x1xf32, #tpu.memory_space<vmem>>, vector<8x1xf32>
    %16 = vector.broadcast %15 : vector<8x1xf32> to vector<8x512xf32>
    %17 = arith.addf %14, %16 : vector<8x512xf32>
    %18 = arith.negf %12 : vector<8x512xf32>
    %19 = math.exp %18 : vector<8x512xf32>
    %cst_16 = arith.constant 1.000000e+00 : f32
    %20 = vector.broadcast %cst_16 : f32 to vector<8x512xf32>
    %21 = arith.addf %20, %19 : vector<8x512xf32>
    %22 = arith.divf %20, %21 : vector<8x512xf32>
    %23 = arith.mulf %22, %17 : vector<8x512xf32>
    %c0_17 = arith.constant 0 : index
    %c0_18 = arith.constant 0 : index
    %24 = memref.load %arg1[%c0_17, %c0_18] : memref<1x1xf32, #tpu.memory_space<smem>>
    %25 = vector.broadcast %24 : f32 to vector<8x512xf32>
    %26 = arith.mulf %23, %25 : vector<8x512xf32>
    %27 = vector.extract_strided_slice %0 {offsets = [0, 0], sizes = [8, 512], strides = [1, 1]} : vector<16x512xf32> to vector<8x512xf32>
    %28 = arith.addf %27, %26 : vector<8x512xf32>
    %c0_19 = arith.constant 0 : index
    %c0_20 = arith.constant 0 : index
    %29 = vector.load %arg9[%c0_19, %c0_20] : memref<8x512xf32, #tpu.memory_space<vmem>>, vector<8x512xf32>
    tpu.vector_store %arg9[%c0_19, %c0_20], %28 {strides = array<i32>} : memref<8x512xf32, #tpu.memory_space<vmem>>, vector<8x512xf32>,
    return
  }
  func.func @transform_0(%arg0: i32) -> (i32, i32) {
    %c0_i32 = arith.constant 0 : i32
    %c0_i32_0 = arith.constant 0 : i32
    %c0_i32_1 = arith.constant 0 : i32
    return %c0_i32, %c0_i32_0 : i32, i32
  }
  func.func @transform_1(%arg0: i32) -> (i32, i32) {
    %c0_i32 = arith.constant 0 : i32
    %c0_i32_0 = arith.constant 0 : i32
    return %c0_i32, %arg0 : i32, i32
  }
  func.func @transform_2(%arg0: i32) -> (i32, i32) {
    %c0_i32 = arith.constant 0 : i32
    %c0_i32_0 = arith.constant 0 : i32
    %c0_i32_1 = arith.constant 0 : i32
    return %c0_i32, %c0_i32_0 : i32, i32
  }
  func.func @transform_3(%arg0: i32) -> (i32, i32) {
    %c0_i32 = arith.constant 0 : i32
    %c0_i32_0 = arith.constant 0 : i32
    %c0_i32_1 = arith.constant 0 : i32
    return %c0_i32, %c0_i32_0 : i32, i32
  }
  func.func @transform_4(%arg0: i32) -> (i32, i32) {
    %c0_i32 = arith.constant 0 : i32
    %c0_i32_0 = arith.constant 0 : i32
    %c0_i32_1 = arith.constant 0 : i32
    return %c0_i32, %c0_i32_0 : i32, i32
  }
  func.func @transform_5(%arg0: i32) -> (i32, i32) {
    %c0_i32 = arith.constant 0 : i32
    %c0_i32_0 = arith.constant 0 : i32
    %c0_i32_1 = arith.constant 0 : i32
    return %c0_i32, %c0_i32_0 : i32, i32
  }
  func.func @transform_6(%arg0: i32) -> (i32, i32) {
    %c0_i32 = arith.constant 0 : i32
    %c0_i32_0 = arith.constant 0 : i32
    %c0_i32_1 = arith.constant 0 : i32
    return %c0_i32, %c0_i32_0 : i32, i32
  }
  func.func @transform_7(%arg0: i32) -> (i32, i32) {
    %c0_i32 = arith.constant 0 : i32
    %c0_i32_0 = arith.constant 0 : i32
    %c0_i32_1 = arith.constant 0 : i32
    return %c0_i32, %c0_i32_0 : i32, i32
  }
  func.func @transform_8(%arg0: i32) -> (i32, i32) {
    %c0_i32 = arith.constant 0 : i32
    %c0_i32_0 = arith.constant 0 : i32
    return %c0_i32, %arg0 : i32, i32
  }
}

</mosaic_0001>

<bundles_post_ra>
// kernel: tpu_custom_call.1
= control target key start
LH: loop header
LB: loop body
LE: loop exit
PB: predicated region body
PF: predicated region fallthrough
CT: control target
= control target key end

     0   :  { %s1535_s0 = inlined_call_operand.<no memory space> [shape: f32[1,1], index: 0, kind: input, shape index: {}]   ;;  %s1536_s1 = inlined_call_operand.hbm [shape: f32[16,1024], index: 1, kind: input, shape index: {}]   ;;  %s1537_s2 = inlined_call_operand.vmem [shape: f32[32,16], index: 2, kind: input, shape index: {}]   ;;  %s1538_s3 = inlined_call_operand.vmem [shape: f32[32,1], index: 3, kind: input, shape index: {}]   ;;  %s1539_s4 = inlined_call_operand.vmem [shape: f32[8,32], index: 4, kind: input, shape index: {}]   ;;  %s1540_s5 = inlined_call_operand.vmem [shape: f32[8,32], index: 5, kind: input, shape index: {}]   ;;  %s1541_s6 = inlined_call_operand.vmem [shape: f32[8,1], index: 6, kind: input, shape index: {}]   ;;  %s1542_s7 = inlined_call_operand.vmem [shape: f32[8,1], index: 7, kind: input, shape index: {}]   ;;  %s1543_s8 = inlined_call_operand.hbm [shape: f32[8,1024], index: 8, kind: output, shape index: {}]  }
   0x1   :  { %13 = sst [smem:[#allocation2]] %s1535_s0 }
   0x2   :  { %14 = vsyncpa [#allocation4], 0 }
   0x3   :  { %16 = vsyncpa [#allocation4 + $0x1], 0 }
   0x4   :  { %17 = vsyncpa [#allocation5], 0 }
   0x5   :  { %19 = vsyncpa [#allocation5 + $0x1], 0  ;;  %s1296_s29 = smov 0   ;;  %s1298_s30 = smov 0  }
   0x6   :  { %s1300_s9 = smov 0   ;;  %s1302_s10 = smov 0  }
   0x7 LB: > { %s1317_s0 = sadd.s32 4294967295, %s1239_s10   ;;  %s1002_s11 = sadd.s32 4294967294, %s1239_s10   ;;  %s1239_s10 = sphi %s1302_s10, %s1557_s10   ;;  %s1235_s9 = sphi %s1300_s9, %s1556_s9   ;;  %s1231_s30 = sphi %s1298_s30, %s1555_s30   ;;  %s1227_s29 = sphi %s1296_s29, %s1554_s29  }
   0x8   : > { %s1321_s12 = sadd.s32 1, %s1239_s10   ;;  %s53_s13 = sadd.s32 1, %s1235_s9 }
   0x9   : > { %s50_s14 = ssub.s32 %s1239_s10, %s1321_s12  ;;  %p60_p0 = scmp.ne.s32.totalorder %s1235_s9, %s1231_s30 }
   0xa   : > { %p51_p1 = scmp.eq.s32.totalorder %s50_s14, 0  ;;  %p61_p2 = scmp.eq.s32.totalorder %s1239_s10, 0 }
   0xb   : > { %p66_p3 = scmp.ne.s32.totalorder %s1231_s30, %s1227_s29  ;;  %p67_p4 = scmp.eq.s32.totalorder %s1317_s0, 0 }
   0xc   : > { %s1333_s15 = scalar_select %p51_p1, %s1235_s9, %s53_s13  }
   0xd   : > { %p1335_p5 = por %p61_p2, %p60_p0  ;;  %p1339_p6 = por %p67_p4, %p66_p3 }
   0xe   : > { %p216_p7 = scmp.eq.s32.totalorder %s1317_s0, 1  ;;  %p222_p8 = scmp.eq.s32.totalorder %s1002_s11, 1 }
   0xf   : > { %p1086_p10 = scmp.lt.s32.totalorder %s1239_s10, 2  ;;  %s263_s20 = sand.u32 1, %s1235_s9  }
  0x10   : > { %p1346_p11 = por %p216_p7, %p60_p0  ;;  %p1350_p12 = por %p222_p8, %p66_p3 }
  0x11   : > { %s1032_s21 = sshll.u32 %s1239_s10, 9  ;;  %s1005_s22 = sshll.u32 %s263_s20, 6 }
  0x12   : > { %s1547_s18 = scalar_select %p1346_p11, 1, 0 }
  0x13   : > { %s1548_s19 = scalar_select %p1350_p12, 1, 0 }
  0x14   : > { %s1359_s25 = scalar_lea.hbm %s1536_s1, %s1032_s21  ;;  %s267_s26 = scalar_lea.vmem [#allocation3], %s1005_s22 }
  0x15   : > { %s274_s27 = sshll.u32 %s267_s26, 4  ;;  %p1363_p13 = pnand %p1086_p10, %p1335_p5  ;;  %s1367_s27 = int_to_ptr.vmem [resolvable:$true] %s274_s27 }
  0x16   : > { %s1370_s11 = scalar_lea.sflag [#allocation4], %s263_s20  ;;  %s1143_s13 = scalar_lea.hbm %s1359_s25, 1024 }
  0x17   : > { %p1144_p1 = scmp.ne.s32.totalorder %s1359_s25, %s1143_s13  ;;  %p1145_p2 = pneg %p1363_p13 }
  0x18   : > { %s1148_s21 = scalar_lea.hbm %s1536_s1, 2048  ;;  %p1149_p5 = scmp.lt.u32.totalorder %s1359_s25, %s1536_s1 }
  0x19   : > { %p1146_p3 = pnand %p1145_p2, %p1144_p1  ;;  %p1150_p7 = scmp.lt.u32.totalorder %s1148_s21, %s1143_s13 }
  0x1a   : > { %p1152_p10 = scmp.lt.u32.totalorder %s1143_s13, %s1359_s25 }
  0x1b   : > { %p1147_p4 = pneg %p1146_p3  ;;  %p1151_p8 = por %p1150_p7, %p1149_p5 }
  0x1d   : > { %p1153_p9 = por %p1152_p10, %p1151_p8 }
  0x1f   : > { %p1154_p0 = pnand %p1153_p9, %p1147_p4 }
  0x21   : > { %1157 = shalt.err (!%p1154_p0)
}
  0x22   : > { %s1158_s20 = scalar_lea.vmem %s1367_s27, 1024  ;;  %s1241_s24 = smov [#allocation3]  }
  0x23   : > { %p1159_p1 = scmp.ne.s32.totalorder %s1367_s27, %s1158_s20  ;;  %s1163_s26 = sshll.u32 %s1241_s24, 4  ;;  %s1164_s26 = int_to_ptr.vmem [resolvable:$false] %s1163_s26 }
  0x24   : > { %s1165_s14 = scalar_lea.vmem %s1164_s26, 2048  ;;  %p1166_p11 = scmp.lt.s32.totalorder %s1367_s27, %s1164_s26 }
  0x25   : > { %p1161_p3 = pnand %p1159_p1, %p1145_p2  ;;  %p1167_p5 = scmp.lt.s32.totalorder %s1165_s14, %s1158_s20 }
  0x27   : > { %p1162_p12 = pneg %p1161_p3  ;;  %p1168_p7 = por %p1167_p5, %p1166_p11 }
  0x29   : > { %p1169_p8 = pnand %p1168_p7, %p1162_p12 }
  0x2b   : > { %1172 = shalt.err (!%p1169_p8)
}
  0x2c   : > { %s1242_s13 = smov 1024   ;;  %s1243_s16 = smov 512  }
  0x2d   : > { %s1244_s21 = smov 32   ;;  %p282_p9 = scmp.lt.s32.totalorder %s1239_s10, 3 }
  0x2e   : > { %1081 = dma.hbm_to_vmem [thread:$0]  (!%p1363_p13), %s1359_s25, 1024, %s1367_s27, %s1370_s11, %s1242_s13, %s1243_s16, %s1244_s21  }
  0x2f   : > { %p1550_p0 = scmp.ge.s32.totalorder %s1239_s10, 1 }
  0x31   : > { %p283_p2 = pnand %p1550_p0, %p282_p9 }
  0x32   : > { %s1402_s22 = sand.u32 (!%p283_p2), 1, %s1231_s30  }
  0x33   : > { %286 = sbr.rel (%p283_p2) target bundleno = 565 (0x235), region = 52  ;;  %s1009_s23 = sshll.u32 (!%p283_p2), %s1402_s22, 6 }
  0x34   : > { %s289_s20 = scalar_lea.sflag (!%p283_p2), [#allocation4], %s1402_s22  ;;  %s292_s24 = scalar_lea.vmem (!%p283_p2), [#allocation3], %s1009_s23 }
  0x3a   : > { %1218 = dma.done.wait (%p1339_p6), %s289_s20, 1024  }
  0x3b   : > { %1220 = vsyncadd (%p1339_p6), %s289_s20, 4294966272  ;;  %v1245_v0 = vmov 0.0   ;;  %v1246_v1 = vmov 0   ;;  %v1412_v2 = vld [vmem:[%s292_s24 + $0x8] sm:$0xff]  ;;  %v1414_v4 = vld [vmem:[%s292_s24 + $0x18] sm:$0xff]  ;;  %vm363_vm0 = vcmask 130048  }
  0x3c   : > { %440 = vmatprep.mubr.f32.mxu0 %v1245_v0  ;;  %529 = vmatprep.mubr.f32.mxu1 %v1245_v0  ;;  %v332_v3 = vld [vmem:[%s292_s24 + $0x28] sm:$0xff]  ;;  %v334_v6 = vld [vmem:[%s292_s24 + $0x38] sm:$0xff]  ;;  %v1417_v7 = vld [vmem:[%s292_s24] sm:$0xff]  ;;  %vm577_vm1 = vcmask 261120   ;;  %s903_s20 = sld [smem:[#allocation2]]  ;;  %s1033_s17 = sshll.u32 %s1317_s0, 9 }
  0x3d   : > { %1125 = vset.pattern.permute.xlu0 %v1246_v1  ;;  %1126 = vset.pattern.permute.xlu1 %v1246_v1  ;;  %v1034_v5 = vpack.c.bf16 %v332_v3, %v1412_v2  ;;  %v331_v8 = vld [vmem:[%s292_s24 + $0x20] sm:$0xff]  ;;  %v1038_v9 = vpack.c.bf16 %v334_v6, %v1414_v4  ;;  %v1421_v11 = vld [vmem:[%s292_s24 + $0x10] sm:$0xff]  ;;  %v340_v17 = vld [vmem:[%s1538_s3 + $0x8] sm:$0xff]  ;;  %s1491_s26 = scalar_lea.hbm %s1543_s8, %s1033_s17  ;;  %s918_s0 = scalar_lea.sflag [#allocation5], %s1402_s22 }
  0x3e   : > { %v1036_v10 = vpack.c.bf16 %v331_v8, %v1417_v7  ;;  %v333_v12 = vld [vmem:[%s292_s24 + $0x30] sm:$0xff]  ;;  %v335_v14 = vld [vmem:[%s1537_s2] sm:$0xff]  ;;  %v342_v18 = vld [vmem:[%s1538_s3 + $0x18] sm:$0xff]  ;;  %s1010_s24 = sshll.u32 %s1402_s22, 5  ;;  %p1551_p11 = scmp.ne.s32.totalorder %s1547_s18, 0 }
  0x3f   : > { %1035 = vmatprep.subr.bf16.mxu0 %v1034_v5  ;;  %v1040_v13 = vpack.c.bf16 %v333_v12, %v1421_v11  ;;  %1039 = vmatprep.subr.bf16.mxu1 %v1038_v9  ;;  %v339_v15 = vld [vmem:[%s1538_s3] sm:$0xff]  ;;  %v341_v16 = vld [vmem:[%s1538_s3 + $0x10] sm:$0xff]  ;;  %v336_v19 = vld [vmem:[%s1537_s2 + $0x8] sm:$0xff]  ;;  %s324_s25 = scalar_lea.vmem [#allocation6], %s1010_s24  ;;  %s1247_s13 = smov [#allocation6]  }
  0x40   : > { %1037 = vmatpush1.bf16.msra.mxu0 %v1036_v10  ;;  %345 = vperm.xlu0 %1125, %v339_v15   ;;  %v571_v20 = vld [vmem:[%s1541_s6] sm:$0xff]  ;;  %v337_v22 = vld [vmem:[%s1537_s2 + $0x10] sm:$0xff]  ;;  %v338_v23 = vld [vmem:[%s1537_s2 + $0x18] sm:$0xff]  ;;  %s932_s27 = sshll.u32 %s324_s25, 4  ;;  %s1177_s16 = sshll.u32 %s1247_s13, 4  ;;  %s1493_s27 = int_to_ptr.vmem [resolvable:$true] %s932_s27  ;;  %s1178_s16 = int_to_ptr.vmem [resolvable:$false] %s1177_s16 }
  0x41   : > { %1041 = vmatpush1.bf16.msra.mxu1 %v1040_v13  ;;  %355 = vperm.xlu1 %1126, %v341_v16   ;;  %v724_v21 = vld [vmem:[%s1542_s7] sm:$0xff]  ;;  %s1173_s14 = scalar_lea.vmem %s1493_s27, 512  ;;  %s1179_s21 = scalar_lea.vmem %s1178_s16, 1024 }
  0x42   : > { %p1174_p6 = scmp.ne.s32.totalorder %s1493_s27, %s1173_s14  ;;  %p1180_p4 = scmp.lt.s32.totalorder %s1493_s27, %s1178_s16 }
  0x43   : > { %1011 = vmatmul.mubr.msk.f32.vlgmr.msra.gmra.mrb[0].mxu0 %vm363_vm0, %v335_v14  ;;  %p1181_p10 = scmp.lt.s32.totalorder %s1179_s21, %s1173_s14 }
  0x44   : > { %1015 = vmatmul.mubr.msk.f32.vlgmr.msra.gmra.mrb[0].mxu1 %vm363_vm0, %v335_v14  ;;  %446 = vmatprep.mubr.f32.mxu0 %v1245_v0  ;;  %p1175_p12 = pnand %p1174_p6, %p1551_p11 }
  0x45   : > { %535 = vmatprep.mubr.f32.mxu1 %v1245_v0  ;;  %350 = vperm.xlu0 %1125, %v340_v17   ;;  %p1182_p1 = por %p1181_p10, %p1180_p4 }
  0x46   : > { %360 = vperm.xlu1 %1126, %v342_v18   ;;  %p1176_p13 = pneg %p1175_p12 }
  0x47   : > { %1012 = vmatmul.mubr.msk.f32.gmra.mrb[2].mxu0 %vm363_vm0, %v336_v19 }
  0x48   : > { %1016 = vmatmul.mubr.msk.f32.gmra.mrb[2].mxu1 %vm363_vm0, %v336_v19  ;;  %452 = vmatprep.mubr.f32.mxu0 %v1245_v0  ;;  %p1183_p3 = pnand %p1182_p1, %p1176_p13 }
  0x49   : > { %541 = vmatprep.mubr.f32.mxu1 %v1245_v0  ;;  %574 = vperm.xlu0 %1125, %v571_v20  }
  0x4a   : > { %727 = vperm.xlu1 %1126, %v724_v21  }
  0x4b   : > { %1013 = vmatmul.mubr.msk.f32.gmra.mrb[4].mxu0 %vm363_vm0, %v337_v22 }
  0x4c   : > { %1017 = vmatmul.mubr.msk.f32.gmra.mrb[4].mxu1 %vm363_vm0, %v337_v22  ;;  %458 = vmatprep.mubr.f32.mxu0 %v1245_v0 }
  0x4d   : > { %547 = vmatprep.mubr.f32.mxu1 %v1245_v0 }
  0x4f   : > { %1014 = vmatmul.mubr.msk.f32.gmra.mrb[6].mxu0 %vm363_vm0, %v338_v23 }
  0x50   : > { %1018 = vmatmul.mubr.msk.f32.gmra.mrb[6].mxu1 %vm363_vm0, %v338_v23  ;;  %645 = vmatprep.mubr.f32.mxu0 %v1245_v0 }
  0x51   : > { %716 = vmatprep.mubr.f32.mxu1 %v1245_v0 }
  0xbf   : > { %v346_v24 = vpop.permute.xlu0 %345 }
  0xc0   : > { %v356_v38 = vpop.permute.xlu1 %355 }
  0xc4   : > { %v351_v30 = vpop.permute.xlu0 %350 }
  0xc5   : > { %v361_v60 = vpop.permute.xlu1 %360 }
 0x116   : > { %v442_v25 = vpop.f32.mrb[0].mxu0 }
 0x117   : > { %v531_v26 = vpop.f32.mrb[0].mxu1  ;;  %v444_v27 = vpop.f32.mrb[1].mxu0  ;;  %v443_v29 = vadd.f32 %v442_v25, %v346_v24  ;;  %v570_v25 = vld [vmem:[%s1539_s4] sm:$0xff] }
 0x118   : > { %v533_v28 = vpop.f32.mrb[1].mxu1  ;;  %v532_v31 = vadd.f32 %v531_v26, %v346_v24  ;;  %v445_v32 = vadd.f32 %v444_v27, %v346_v24  ;;  %v723_v26 = vld [vmem:[%s1540_s5] sm:$0xff]  ;;  %v575_v27 = vpop.permute.xlu0 %574 }
 0x119   : > { %v534_v34 = vadd.f32 %v533_v28, %v346_v24  ;;  %v554_v42 = vmax.f32 %v443_v29, 0.0 }
 0x11a   : > { %v448_v33 = vpop.f32.mrb[2].mxu0  ;;  %v556_v45 = vmax.f32 %v532_v31, 0.0  ;;  %v555_v46 = vmax.f32 %v445_v32, 0.0 }
 0x11b   : > { %v449_v35 = vadd.f32 %v448_v33, %v351_v30  ;;  %v537_v36 = vpop.f32.mrb[2].mxu1  ;;  %v450_v37 = vpop.f32.mrb[3].mxu0  ;;  %v557_v50 = vmax.f32 %v534_v34, 0.0 }
 0x11c   : > { %v538_v39 = vadd.f32 %v537_v36, %v351_v30  ;;  %v451_v40 = vadd.f32 %v450_v37, %v351_v30  ;;  %v539_v41 = vpop.f32.mrb[3].mxu1 }
 0x11d   : > { %v558_v43 = vmax.f32 %v449_v35, 0.0  ;;  %v540_v44 = vadd.f32 %v539_v41, %v351_v30 }
 0x11e   : > { %v560_v47 = vmax.f32 %v538_v39, 0.0  ;;  %v559_v48 = vmax.f32 %v451_v40, 0.0  ;;  %v454_v49 = vpop.f32.mrb[4].mxu0 }
 0x11f   : > { %v1044_v51 = vpack.c.bf16 %v558_v43, %v554_v42  ;;  %v561_v52 = vmax.f32 %v540_v44, 0.0  ;;  %v543_v53 = vpop.f32.mrb[4].mxu1  ;;  %v456_v54 = vpop.f32.mrb[5].mxu0  ;;  %v455_v59 = vadd.f32 %v454_v49, %v356_v38 }
 0x120   : > { %v1052_v55 = vpack.c.bf16 %v560_v47, %v556_v45  ;;  %v1042_v56 = vpack.c.bf16 %v559_v48, %v555_v46  ;;  %v545_v57 = vpop.f32.mrb[5].mxu1  ;;  %v544_v61 = vadd.f32 %v543_v53, %v356_v38  ;;  %v457_v62 = vadd.f32 %v456_v54, %v356_v38 }
 0x121   : > { %v1050_v58 = vpack.c.bf16 %v561_v52, %v557_v50  ;;  %v546_v1 = vadd.f32 %v545_v57, %v356_v38  ;;  %v562_v12 = vmax.f32 %v455_v59, 0.0  ;;  %v904_v54 = vstv %s903_s20 }
 0x122   : > { %v460_v63 = vpop.f32.mrb[6].mxu0  ;;  %1043 = vmatprep.subr.bf16.mxu0 %v1042_v56  ;;  %v564_v15 = vmax.f32 %v544_v61, 0.0  ;;  %v563_v16 = vmax.f32 %v457_v62, 0.0 }
 0x123   : > { %v461_v3 = vadd.f32 %v460_v63, %v361_v60  ;;  %v549_v5 = vpop.f32.mrb[6].mxu1  ;;  %1051 = vmatprep.subr.bf16.mxu1 %v1050_v58  ;;  %v462_v6 = vpop.f32.mrb[7].mxu0  ;;  %1045 = vmatpush1.bf16.msra.mxu0 %v1044_v51  ;;  %v565_v19 = vmax.f32 %v546_v1, 0.0 }
 0x124   : > { %v550_v8 = vadd.f32 %v549_v5, %v361_v60  ;;  %v463_v9 = vadd.f32 %v462_v6, %v361_v60  ;;  %v551_v10 = vpop.f32.mrb[7].mxu1  ;;  %1053 = vmatpush1.bf16.msra.mxu1 %v1052_v55 }
 0x125   : > { %v566_v13 = vmax.f32 %v461_v3, 0.0  ;;  %v552_v14 = vadd.f32 %v551_v10, %v361_v60 }
 0x126   : > { %v568_v17 = vmax.f32 %v550_v8, 0.0  ;;  %v567_v18 = vmax.f32 %v463_v9, 0.0 }
 0x127   : > { %v1048_v20 = vpack.c.bf16 %v566_v13, %v562_v12  ;;  %v569_v21 = vmax.f32 %v552_v14, 0.0 }
 0x128   : > { %v1056_v22 = vpack.c.bf16 %v568_v17, %v564_v15  ;;  %v1046_v23 = vpack.c.bf16 %v567_v18, %v563_v16 }
 0x129   : > { %v1054_v24 = vpack.c.bf16 %v569_v21, %v565_v19 }
 0x12a   : > { %1047 = vmatprep.subr.bf16.mxu0 %v1046_v23 }
 0x12b   : > { %1055 = vmatprep.subr.bf16.mxu1 %v1054_v24  ;;  %1049 = vmatpush1.bf16.msra.mxu0 %v1048_v20 }
 0x12c   : > { %1057 = vmatpush1.bf16.msra.mxu1 %v1056_v22  ;;  %1059 = vmatprep.subr.bf16.mxu0 %v1042_v56 }
 0x12d   : > { %1067 = vmatprep.subr.bf16.mxu1 %v1050_v58 }
 0x12e   : > { %1019 = vmatmul.mubr.msk.f32.vlgmr.msra.gmra.mrb[8].mxu0 %vm577_vm1, %v570_v25 }
 0x12f   : > { %1020 = vmatmul.mubr.msk.f32.vlgmr.msra.gmra.mrb[8].mxu1 %vm577_vm1, %v570_v25  ;;  %1061 = vmatpush1.bf16.msra.mxu0 %v1044_v51  ;;  %v728_v51 = vpop.permute.xlu1 %727 }
 0x130   : > { %1069 = vmatpush1.bf16.msra.mxu1 %v1052_v55  ;;  %1063 = vmatprep.subr.bf16.mxu0 %v1046_v23 }
 0x131   : > { %1071 = vmatprep.subr.bf16.mxu1 %v1054_v24  ;;  %797 = vmatprep.mubr.f32.mxu0 %v1245_v0 }
 0x132   : > { %868 = vmatprep.mubr.f32.mxu1 %v1245_v0 }
 0x133   : > { %1065 = vmatpush1.bf16.msra.mxu0 %v1048_v20 }
 0x134   : > { %1073 = vmatpush1.bf16.msra.mxu1 %v1056_v22 }
 0x136   : > { %1021 = vmatmul.mubr.msk.f32.vlgmr.msra.gmra.mrb[10].mxu0 %vm577_vm1, %v723_v26 }
 0x137   : > { %1022 = vmatmul.mubr.msk.f32.vlgmr.msra.gmra.mrb[10].mxu1 %vm577_vm1, %v723_v26 }
 0x201   : > { %v647_v28 = vpop.f32.mrb[8].mxu0 }
 0x202   : > { %v648_v29 = vadd.f32 %v647_v28, %v575_v27  ;;  %v718_v30 = vpop.f32.mrb[8].mxu1  ;;  %v649_v31 = vpop.f32.mrb[9].mxu0 }
 0x203   : > { %v719_v32 = vadd.f32 %v718_v30, %v575_v27  ;;  %v650_v33 = vadd.f32 %v649_v31, %v575_v27  ;;  %v720_v34 = vpop.f32.mrb[9].mxu1 }
 0x204   : > { %v1023_v35 = vmul.f32 -1.442695, %v648_v29  ;;  %v721_v0 = vadd.f32 %v720_v34, %v575_v27 }
 0x205   : > { %v1025_v36 = vmul.f32 -1.442695, %v719_v32  ;;  %v1024_v37 = vmul.f32 -1.442695, %v650_v33 }
 0x206   : > { %1127 = vpow2.f32 %v1023_v35  ;;  %v1026_v38 = vmul.f32 -1.442695, %v721_v0 }
 0x207   : > { %1129 = vpow2.f32 %v1025_v36 }
 0x208   : > { %1131 = vpow2.f32 %v1024_v37 }
 0x209   : > { %1133 = vpow2.f32 %v1026_v38  ;;  %v799_v39 = vpop.f32.mrb[10].mxu0 }
 0x20a   : > { %v870_v40 = vpop.f32.mrb[10].mxu1  ;;  %v801_v41 = vpop.f32.mrb[11].mxu0  ;;  %v800_v52 = vadd.f32 %v799_v39, %v728_v51 }
 0x20b   : > { %v872_v42 = vpop.f32.mrb[11].mxu1  ;;  %v871_v55 = vadd.f32 %v870_v40, %v728_v51  ;;  %v802_v58 = vadd.f32 %v801_v41, %v728_v51 }
 0x20c   : > { %v873_v61 = vadd.f32 %v872_v42, %v728_v51 }
 0x210   : > { %v1128_v43 = vpop.eup %1127 }
 0x211   : > { %v1130_v44 = vpop.eup %1129  ;;  %v887_v45 = vadd.f32 1.0, %v1128_v43 }
 0x212   : > { %v1132_v46 = vpop.eup %1131  ;;  %v889_v47 = vadd.f32 1.0, %v1130_v44 }
 0x213   : > { %v1134_v48 = vpop.eup %1133  ;;  %1135 = vrcp.f32 %v887_v45  ;;  %v888_v49 = vadd.f32 1.0, %v1132_v46 }
 0x214   : > { %1137 = vrcp.f32 %v889_v47  ;;  %v890_v50 = vadd.f32 1.0, %v1134_v48 }
 0x215   : > { %1139 = vrcp.f32 %v888_v49 }
 0x216   : > { %1141 = vrcp.f32 %v890_v50 }
 0x21d   : > { %v1136_v53 = vpop.eup %1135 }
 0x21e   : > { %v1138_v56 = vpop.eup %1137  ;;  %v899_v57 = vmul.f32 %v1136_v53, %v800_v52 }
 0x21f   : > { %v1140_v59 = vpop.eup %1139  ;;  %v901_v60 = vmul.f32 %v1138_v56, %v871_v55 }
 0x220   : > { %v1142_v62 = vpop.eup %1141  ;;  %v905_v63 = vmul.f32 %v904_v54, %v899_v57  ;;  %v900_v1 = vmul.f32 %v1140_v59, %v802_v58 }
 0x221   : > { %v907_v3 = vmul.f32 %v904_v54, %v901_v60  ;;  %v902_v5 = vmul.f32 %v1142_v62, %v873_v61 }
 0x222   : > { %v909_v6 = vadd.f32 %v905_v63, %v1417_v7  ;;  %v906_v8 = vmul.f32 %v904_v54, %v900_v1 }
 0x223   : > { %v911_v9 = vadd.f32 %v907_v3, %v1421_v11  ;;  %v908_v10 = vmul.f32 %v904_v54, %v902_v5 }
 0x224   : > { %913 = vst [vmem:[%s324_s25] sm:$0xff] %v909_v6  ;;  %v910_v12 = vadd.f32 %v906_v8, %v1412_v2 }
 0x225   : > { %915 = vst [vmem:[%s324_s25 + $0x10] sm:$0xff] %v911_v9  ;;  %v912_v13 = vadd.f32 %v908_v10, %v1414_v4 }
 0x226   : > { %914 = vst [vmem:[%s324_s25 + $0x8] sm:$0xff] %v910_v12 }
 0x227   : > { %916 = vst [vmem:[%s324_s25 + $0x18] sm:$0xff] %v912_v13 }
 0x228   : > { %1186 = shalt.err (!%p1183_p3)
}
 0x229   : > { %s1187_s22 = scalar_lea.hbm %s1491_s26, 512  ;;  %s1191_s24 = scalar_lea.hbm %s1543_s8, 1024 }
 0x22a   : > { %p1188_p5 = scmp.ne.s32.totalorder %s1491_s26, %s1187_s22  ;;  %p1192_p9 = scmp.lt.u32.totalorder %s1491_s26, %s1543_s8 }
 0x22b   : > { %p1193_p0 = scmp.lt.u32.totalorder %s1191_s24, %s1187_s22  ;;  %p1195_p6 = scmp.lt.u32.totalorder %s1187_s22, %s1491_s26 }
 0x22c   : > { %p1189_p7 = pnand %p1188_p5, %p1551_p11 }
 0x22d   : > { %p1194_p2 = por %p1193_p0, %p1192_p9 }
 0x22e   : > { %p1190_p8 = pneg %p1189_p7 }
 0x22f   : > { %p1196_p12 = por %p1195_p6, %p1194_p2 }
 0x231   : > { %p1197_p13 = pnand %p1196_p12, %p1190_p8 }
 0x233   : > { %1200 = shalt.err (!%p1197_p13)
}
 0x234   : > { %1076 = dma.vmem_to_hbm [thread:$0]  (%p1551_p11), %s1493_s27, 512, %s1491_s26, %s918_s0  }
 0x235 PF: > { %s944_s28 = sand.u32 1, %s1227_s29   ;;  %p1552_p4 = scmp.ne.s32.totalorder %s1548_s19, 0 }
 0x236   : > { %p1553_p10 = scmp.ge.s32.totalorder %s1239_s10, 2  ;;  %s945_s11 = scalar_lea.sflag [#allocation5], %s944_s28 }
 0x238   : > { %p1083_p1 = pnand %p1553_p10, %p1552_p4 }
 0x23a   : > { %1222 = dma.done.wait (!%p1083_p1), %s945_s11, 512  }
 0x23b   : > { %1224 = vsyncadd (!%p1083_p1), %s945_s11, 4294966784  ;;  %p22_p3 = scmp.ge.s32.totalorder %s1321_s12, 4   ;;  %s1554_s29 = smov %s1231_s30 }
 0x23c   : > { %s1555_s30 = smov %s1235_s9  ;;  %s1556_s9 = smov %s1333_s15 }
 0x23d   : > { %s1557_s10 = smov %s1321_s12  ;;  %24 = sbr.rel (!%p22_p3) target bundleno = 7 (0x7), region = 97 }
 0x244   :  { %950 = vsyncpa [#allocation4], 1 }
 0x245   :  { %952 = vsyncpa [#allocation4 + $0x1], 1 }
 0x246   :  { %953 = vsyncpa [#allocation5], 1 }
 0x247   :  { %955 = vsyncpa [#allocation5 + $0x1], 1 }

</bundles_post_ra>
